<compile_context>
chip_gen: v7x
topology: tpu7x:2x2x1
jax: 0.10.0
libtpu: 0.0.40
codegen_flags: <defaults>
</compile_context>

<pallas_src>
import functools

import jax
import jax.numpy as jnp
from jax import lax
from jax.experimental import pallas as pl
from jax.experimental.pallas import tpu as pltpu


def _round_up(x, m):
    return (x + m - 1) // m * m


def _cdiv(a, b):
    return -(-a // b)


def net_kernel(x_ref, wt_ref, w_ref, o_ref):
    """One batch tile of the fused tied-MLP forward.

    x_ref : (TB, D)   input tile (batch-padded only; last dim = full array extent)
    wt_ref: (D, H)    pre-transposed tied weight (resident, constant index map)
    w_ref : (H, Dp)   tied weight, last dim zero-padded to 128 for lane-dense out
    o_ref : (TB, Dp)  output tile
    """
    # h = x @ W^T, expressed as a standard contraction against the pre-transposed
    # weight -> no in-kernel transpose / relayout, MXU fed directly.
    h = lax.dot_general(
        x_ref[...], wt_ref[...],
        dimension_numbers=(((1,), (0,)), ((), ())),
        preferred_element_type=jnp.float32,
    )
    # y = h @ W (tied unembedding), f32 accumulation. Cast h to the weight dtype
    # so mixed precision (bf16 weights) works; no-op in the pure f32 path.
    y = lax.dot_general(
        h.astype(w_ref.dtype), w_ref[...],
        dimension_numbers=(((1,), (0,)), ((), ())),
        preferred_element_type=jnp.float32,
    )
    # nonlinearity = relu; scale_factor = 1.0 (with_scale_factor=False).
    o_ref[...] = jnp.maximum(y, 0.0).astype(o_ref.dtype)


@functools.partial(jax.jit, static_argnames=("use_bf16",))
def net_forward(x, w, *, use_bf16=False):
    """x: (B, D) float32, w: (H, D) float32 (embedding weight, torch convention)."""
    B, D = x.shape
    H, D2 = w.shape
    assert D == D2

    compute_dtype = jnp.bfloat16 if use_bf16 else x.dtype
    out_dtype = x.dtype
    c_isz = jnp.dtype(compute_dtype).itemsize
    o_isz = jnp.dtype(out_dtype).itemsize

    # Only the output lane dim is padded (to 128) for unmasked, lane-dense stores.
    # Contraction dims (D in matmul 1, H in matmul 2) use full-extent blocks.
    Dp = _round_up(D, 128)

    # ---- generation-aware VMEM budget (128 MiB v5e/v6e, 64 MiB/TC v7x) ------
    try:
        vmem_cap = int(pltpu.get_tpu_info().vmem_capacity_bytes)
    except Exception:  # non-TPU backends / interpret mode: conservative default
        vmem_cap = 64 << 20
    vmem_cap_usable = vmem_cap - (8 << 20)

    # Resident weights; assume the default double-buffering worst case, and the
    # compiler's (8,128) lane/sublane padding of VMEM tiles.
    d_sub, h_sub = _round_up(D, 8), _round_up(H, 8)
    h_lane = _round_up(H, 128)
    weight_vmem = 2 * (d_sub * h_lane + h_sub * Dp) * c_isz

    # ---- batch tile selection ------------------------------------------------
    # Target >= ~2 MiB of HBM traffic per grid step to amortize the ~0.35 us
    # per-step pipeline overhead, but stay inside the per-step VMEM budget.
    row_hbm_bytes = D * c_isz + Dp * o_isz
    target_rows = (2 << 20) // max(row_hbm_bytes, 1)
    target_rows = max(256, min(2048, target_rows))

    per_row_vmem = 2 * Dp * (c_isz + o_isz) + h_lane * 4  # 2-deep io pipeline + f32 h
    tile_budget = max(vmem_cap_usable - weight_vmem - (4 << 20), 2 << 20)
    max_rows_vmem = max(8, (tile_budget // per_row_vmem) // 8 * 8)
    target_rows = max(8, _round_up(min(target_rows, max_rows_vmem), 8))

    # Split B into near-equal tiles to minimize batch padding.
    n_steps = max(1, _cdiv(B, target_rows))
    # Keep >=2 grid steps for large batches so dimension_semantics=('parallel',)
    # can shard the batch across v7x's two TensorCores.
    if n_steps == 1 and B >= 1024:
        n_steps = 2
    tile_b = _round_up(_cdiv(B, n_steps), 8)
    Bp = n_steps * tile_b
    grid = (n_steps,)

    # ---- inputs: pad only what is needed (zero padding is value-preserving) --
    x_c = x.astype(compute_dtype)
    w_c = w.astype(compute_dtype)
    xp = x_c if Bp == B else jnp.pad(x_c, ((0, Bp - B), (0, 0)))
    wt = w_c.T                                                    # (D, H)
    wp = w_c if Dp == D else jnp.pad(w_c, ((0, 0), (0, Dp - D)))  # (H, Dp)

    vmem_needed = (weight_vmem
                   + 2 * tile_b * Dp * (c_isz + o_isz)
                   + tile_b * h_lane * 4
                   + (4 << 20))
    vmem_limit = int(min(max(vmem_needed, 32 << 20), vmem_cap_usable))

    cost = pl.CostEstimate(
        flops=4 * Bp * H * D,
        transcendentals=0,
        bytes_accessed=int(Bp * D * c_isz + (D * H + H * Dp) * c_isz
                           + Bp * Dp * o_isz),
    )

    out_p = pl.pallas_call(
        net_kernel,
        out_shape=jax.ShapeDtypeStruct((Bp, Dp), out_dtype),
        grid_spec=pltpu.PrefetchScalarGridSpec(
            num_scalar_prefetch=0,
            grid=grid,
            in_specs=[
                pl.BlockSpec((tile_b, D), lambda i: (i, 0)),   # x tile
                pl.BlockSpec((D, H), lambda i: (0, 0)),        # W^T (resident)
                pl.BlockSpec((H, Dp), lambda i: (0, 0)),       # W   (resident)
            ],
            out_specs=pl.BlockSpec((tile_b, Dp), lambda i: (i, 0)),
        ),
        compiler_params=pltpu.CompilerParams(
            dimension_semantics=("parallel",),
            vmem_limit_bytes=vmem_limit,
        ),
        cost_estimate=cost,
    )(xp, wt, wp)

    if Bp == B and Dp == D:
        return out_p
    return out_p[:B, :D]


def net_forward_ref(x, w):
    """Pure-JAX reference matching the PyTorch forward exactly."""
    h = x @ w.T
    y = h @ w
    return jnp.maximum(y, 0.0)


if __name__ == "__main__":
    # Small shapes consistent with the module: batch=16, input_dim=16, hidden_dim=32.
    B, D, H = 16, 16, 32

    key = jax.random.PRNGKey(0)
    kx, kw, kx2, kx3, kw3 = jax.random.split(key, 5)

    # Deterministic synthetic params: mimic nn.Linear default init U(-1/sqrt(D), 1/sqrt(D)).
    bound = 1.0 / jnp.sqrt(jnp.array(D, jnp.float32))
    w = jax.random.uniform(kw, (H, D), jnp.float32, minval=-bound, maxval=bound)
    x = jax.random.normal(kx, (B, D), jnp.float32)

    out = jax.block_until_ready(net_forward(x, w))
    ref = net_forward_ref(x, w)
    assert out.shape == (B, D)
    assert jnp.allclose(out, ref, atol=1e-5, rtol=1e-5), "mismatch vs reference (toy batch)"

    # Non-divisible batch: padding-minimizing tiling (tile_b=304 -> 4 pad rows, not 212).
    x2 = jax.random.normal(kx2, (300, D), jnp.float32)
    out2 = jax.block_until_ready(net_forward(x2, w))
    ref2 = net_forward_ref(x2, w)
    assert out2.shape == (300, D)
    assert jnp.allclose(out2, ref2, atol=1e-5, rtol=1e-5), "mismatch vs reference (padded batch)"

    # Lane-aligned shapes: no feature/output padding, inputs pass straight through.
    D3, H3, B3 = 128, 256, 64
    bound3 = 1.0 / jnp.sqrt(jnp.array(D3, jnp.float32))
    w3 = jax.random.uniform(kw3, (H3, D3), jnp.float32, minval=-bound3, maxval=bound3)
    x3 = jax.random.normal(kx3, (B3, D3), jnp.float32)
    out3 = jax.block_until_ready(net_forward(x3, w3))
    ref3 = net_forward_ref(x3, w3)
    assert out3.shape == (B3, D3)
    assert jnp.allclose(out3, ref3, atol=1e-4, rtol=1e-4), "mismatch vs reference (aligned shapes)"

    print("KERNEL_OK")
</pallas_src>

<mosaic_0001>
module attributes {stable_mosaic.version = 11 : i64} {
  func.func @net_kernel(%arg0: i32, %arg1: memref<16x16xf32, #tpu.memory_space<vmem>>, %arg2: memref<16x32xf32, #tpu.memory_space<vmem>>, %arg3: memref<32x128xf32, #tpu.memory_space<vmem>>, %arg4: memref<16x128xf32, #tpu.memory_space<vmem>>) attributes {dimension_semantics = [#tpu.dimension_semantics<parallel>], iteration_bounds = array<i64: 1>, scalar_prefetch = 0 : i64, scratch_operands = 0 : i64, tpu.core_type = #tpu.core_type<tc>, window_params = [{transform_indices = @transform_0, window_bounds = array<i64: 16, 16>}, {pipeline_mode = #tpu.pipeline_mode<synchronous>, transform_indices = @transform_1, window_bounds = array<i64: 16, 32>}, {pipeline_mode = #tpu.pipeline_mode<synchronous>, transform_indices = @transform_2, window_bounds = array<i64: 32, 128>}, {transform_indices = @transform_3, window_bounds = array<i64: 16, 128>}]} {
    %c0 = arith.constant 0 : index
    %c0_0 = arith.constant 0 : index
    %0 = vector.load %arg1[%c0, %c0_0] : memref<16x16xf32, #tpu.memory_space<vmem>>, vector<16x16xf32>
    %c0_1 = arith.constant 0 : index
    %c0_2 = arith.constant 0 : index
    %1 = vector.load %arg2[%c0_1, %c0_2] : memref<16x32xf32, #tpu.memory_space<vmem>>, vector<16x32xf32>
    %cst = arith.constant dense<0.000000e+00> : vector<16x32xf32>
    %2 = tpu.matmul %0, %1, %cst {dimension_numbers = #tpu.dot_dimension_numbers<[1], [0], [0], [1], [0, 0, 1, 1], [], []>} : vector<16x16xf32>, vector<16x32xf32>, vector<16x32xf32> -> vector<16x32xf32>
    %c0_3 = arith.constant 0 : index
    %c0_4 = arith.constant 0 : index
    %3 = vector.load %arg3[%c0_3, %c0_4] : memref<32x128xf32, #tpu.memory_space<vmem>>, vector<32x128xf32>
    %cst_5 = arith.constant dense<0.000000e+00> : vector<16x128xf32>
    %4 = tpu.matmul %2, %3, %cst_5 {dimension_numbers = #tpu.dot_dimension_numbers<[1], [0], [0], [1], [0, 0, 1, 1], [], []>} : vector<16x32xf32>, vector<32x128xf32>, vector<16x128xf32> -> vector<16x128xf32>
    %cst_6 = arith.constant 0.000000e+00 : f32
    %5 = vector.broadcast %cst_6 : f32 to vector<16x128xf32>
    %6 = arith.maximumf %4, %5 : vector<16x128xf32>
    %c0_7 = arith.constant 0 : index
    %c0_8 = arith.constant 0 : index
    %7 = vector.load %arg4[%c0_7, %c0_8] : memref<16x128xf32, #tpu.memory_space<vmem>>, vector<16x128xf32>
    tpu.vector_store %arg4[%c0_7, %c0_8], %6 {strides = array<i32>} : memref<16x128xf32, #tpu.memory_space<vmem>>, vector<16x128xf32>,
    return
  }
  func.func @transform_0(%arg0: i32) -> (i32, i32) {
    %c0_i32 = arith.constant 0 : i32
    %c0_i32_0 = arith.constant 0 : i32
    return %arg0, %c0_i32 : i32, i32
  }
  func.func @transform_1(%arg0: i32) -> (i32, i32) {
    %c0_i32 = arith.constant 0 : i32
    %c0_i32_0 = arith.constant 0 : i32
    %c0_i32_1 = arith.constant 0 : i32
    return %c0_i32, %c0_i32_0 : i32, i32
  }
  func.func @transform_2(%arg0: i32) -> (i32, i32) {
    %c0_i32 = arith.constant 0 : i32
    %c0_i32_0 = arith.constant 0 : i32
    %c0_i32_1 = arith.constant 0 : i32
    return %c0_i32, %c0_i32_0 : i32, i32
  }
  func.func @transform_3(%arg0: i32) -> (i32, i32) {
    %c0_i32 = arith.constant 0 : i32
    %c0_i32_0 = arith.constant 0 : i32
    return %arg0, %c0_i32 : i32, i32
  }
}

</mosaic_0001>

<bundles_post_ra>
// kernel: net_forward.1
= control target key start
LH: loop header
LB: loop body
LE: loop exit
PB: predicated region body
PF: predicated region fallthrough
CT: control target
= control target key end

     0   :  { %vm19_vm0 = vcmask 130048   ;;  %s339_s0 = inlined_call_operand.vmem [shape: f32[16,16], index: 0, kind: input, shape index: {}]   ;;  %s340_s1 = inlined_call_operand.vmem [shape: f32[16,32], index: 1, kind: input, shape index: {}]   ;;  %s341_s2 = inlined_call_operand.vmem [shape: f32[32,128], index: 2, kind: input, shape index: {}]   ;;  %s342_s3 = inlined_call_operand.hbm [shape: f32[16,128], index: 3, kind: output, shape index: {}]  }
   0x1   :  { %v17_v0 = vld [vmem:[%s340_s1] sm:$0xff]  ;;  %v18_v1 = vld [vmem:[%s340_s1 + $0x8] sm:$0xff]  ;;  %v103_v7 = vld [vmem:[%s341_s2 + $0x10] sm:$0xff] }
   0x2   :  { %v15_v2 = vld [vmem:[%s339_s0] sm:$0xff]  ;;  %v239_v3 = vpack.c.bf16 %v18_v1, %v17_v0  ;;  %v102_v5 = vld [vmem:[%s341_s2 + $0x8] sm:$0xff]  ;;  %v104_v8 = vld [vmem:[%s341_s2 + $0x18] sm:$0xff] }
   0x3   :  { %225 = vmatprep.mubr.msk.f32.mxu0 %vm19_vm0, %v15_v2  ;;  %v101_v4 = vld [vmem:[%s341_s2] sm:$0xff] }
   0x4   :  { %v243_v6 = vpack.c.bf16 %v102_v5, %v101_v4 }
   0x5   :  { %8 = vsyncpa [#allocation3], 0  ;;  %240 = vmatprep.subr.bf16.mxu0 %v239_v3  ;;  %v247_v9 = vpack.c.bf16 %v104_v8, %v103_v7  ;;  %v16_v10 = vld [vmem:[%s339_s0 + $0x8] sm:$0xff]  ;;  %vm105_vm1 = vcmask 261120   ;;  %s278_s2 = smov [#allocation2]  }
   0x6   :  { %242 = vmatpush3.bf16.msra.mxu0 %v239_v3  ;;  %244 = vmatprep.subr.bf16.mxu1 %v243_v6  ;;  %s196_s27 = sshll.u32 %s278_s2, 4  ;;  %s197_s27 = int_to_ptr.vmem [resolvable:$true] %s196_s27 }
   0x7   :  { %246 = vmatpush3.bf16.msra.mxu1 %v243_v6  ;;  %s254_s0 = scalar_lea.vmem %s197_s27, 256  ;;  %p259_p1 = scmp.lt.s32.totalorder %s197_s27, %s197_s27 }
   0x8   :  { %248 = vmatprep.subr.bf16.mxu1 %v247_v9  ;;  %p255_p0 = scmp.ne.s32.totalorder %s197_s27, %s254_s0  ;;  %p260_p2 = scmp.lt.s32.totalorder %s254_s0, %s254_s0 }
   0x9   :  { %226 = vmatmul.mubr.msk.f32.vlgmr.msra.gmra.mrb[0].mxu0 %vm19_vm0, %v16_v10 }
   0xa   :  { %p261_p3 = por %p260_p2, %p259_p1 }
   0xb   :  { %250 = vmatpush3.bf16.msra.mxu1 %v247_v9 }
   0xc   :  { %p262_p4 = pnand %p261_p3, %p255_p0 }
  0xdc   :  { %v227_v11 = vpop.f32.mrb[0].mxu0 }
  0xdd   :  { %v92_v12 = vpop.f32.mrb[1].mxu0 }
  0xde   :  { %236 = vmatprep.mubr.msk.f32.mxu1 %vm105_vm1, %v92_v12 }
  0xdf   :  { %237 = vmatmul.mubr.msk.f32.vlgmr.msra.gmra.mrb[0].mxu1 %vm105_vm1, %v227_v11 }
 0x1b2   :  { %v238_v13 = vpop.f32.mrb[0].mxu1 }
 0x1b3   :  { %v188_v14 = vmax.f32 %v238_v13, 0.0  ;;  %v178_v15 = vpop.f32.mrb[1].mxu1 }
 0x1b4   :  { %v187_v16 = vmax.f32 %v178_v15, 0.0 }
 0x1b5   :  { %190 = vst [vmem:[#allocation2 + $0x8] sm:$0xff] %v188_v14 }
 0x1b6   :  { %189 = vst [vmem:[#allocation2] sm:$0xff] %v187_v16 }
 0x1b7   :  { %265 = shalt.err (!%p262_p4)
}
 0x1b8   :  { %s266_s30 = scalar_lea.hbm %s342_s3, 256 }
 0x1b9   :  { %p267_p5 = scmp.ne.s32.totalorder %s342_s3, %s266_s30  ;;  %p270_p6 = scmp.lt.u32.totalorder %s266_s30, %s342_s3 }
 0x1bb   :  { %p272_p7 = pnand %p270_p6, %p267_p5 }
 0x1bd   :  { %275 = shalt.err (!%p272_p7)
}
 0x1be   :  { %s279_s8 = smov 128   ;;  %s280_s9 = smov 8  }
 0x1bf   :  { %202 = dma.vmem_to_hbm [thread:$0]  %s197_s27, 256, %s342_s3, [#allocation3], %s279_s8, %s279_s8, %s280_s9  }
 0x1c0   :  { %276 = dma.done.wait [#allocation3], 256  }
 0x1c1   :  { %277 = vsyncadd [#allocation3], 4294967040 }
 0x1c2   :  { %206 = vsyncpa [#allocation3], 1 }

</bundles_post_ra>
